<compile_context>
chip_gen: v5e
topology: v5e:2x2
jax: 0.10.0
libtpu: 0.0.40
codegen_flags: <defaults>
</compile_context>

<pallas_src>
import functools

import jax
import jax.numpy as jnp
from jax.experimental import pallas as pl
from jax.experimental.pallas import tpu as pltpu


def _round_up(x, m):
    return ((x + m - 1) // m) * m


def _choose_batch_tile(batch, block_b):
    """Batch tile: large (amortize ~0.35us/step pipeline overhead) but capped
    so the grid has >=2 steps when the batch is big enough (v7x dual-TC)."""
    if batch <= 16:
        return batch                       # single full-dim block (always legal)
    tb = min(block_b, _round_up(pl.cdiv(batch, 2), 16))
    return min(tb, _round_up(batch, 16))


def _policy_net_kernel(x_ref, w1_ref, b1_ref, w2_ref, b2_ref, o_ref, *,
                       action_bound):
    # fc1: cast x to bf16 in-register (fused, VPU co-issues under DMA/MXU),
    # MXU matmul with f32 accumulation, then f32 bias + ReLU.
    x = x_ref[...].astype(jnp.bfloat16)                       # (TB, S)
    h = jnp.dot(x, w1_ref[...], preferred_element_type=jnp.float32)
    h = jnp.maximum(h + b1_ref[...], 0.0)                     # (TB, Hp) f32
    # fc2: bf16 MXU matmul (f32 acc), f32 bias, tanh, compile-time bound scale.
    a = jnp.dot(h.astype(jnp.bfloat16), w2_ref[...],
                preferred_element_type=jnp.float32)
    a = a + b2_ref[...]                                       # (TB, A) f32
    o_ref[...] = (jnp.tanh(a) * action_bound).astype(o_ref.dtype)


def prepare_policy_net_params(w1, b1, w2, b2):
    """One-time prep (outside the hot path).

    w1: (state_dim, hidden_dim), b1: (hidden_dim,),
    w2: (hidden_dim, action_dim), b2: (action_dim,)  -- already (in, out),
    i.e. the transpose of torch.nn.Linear.weight.

    Only the hidden dim is zero-padded to 128 lanes (lane-dense intermediate);
    state and action dims are left exactly as-is so the streamed x / out
    arrays carry no padding bytes over HBM.  Weights are cast to bf16 once.
    """
    S, H = w1.shape
    A = w2.shape[1]
    Hp = _round_up(H, 128)

    w1_p = jnp.zeros((S, Hp), jnp.bfloat16).at[:, :H].set(w1.astype(jnp.bfloat16))
    b1_p = jnp.zeros((1, Hp), jnp.float32).at[0, :H].set(b1.astype(jnp.float32))
    w2_p = jnp.zeros((Hp, A), jnp.bfloat16).at[:H, :].set(w2.astype(jnp.bfloat16))
    b2_p = b2.astype(jnp.float32).reshape(1, A)
    return w1_p, b1_p, w2_p, b2_p


def policy_net_forward(x, w1_p, b1_p, w2_p, b2_p, action_bound, *,
                       block_b=1024):
    """x: (B, state_dim) f32 (unpadded). Params from prepare_policy_net_params.
    Returns (B, action_dim) f32 -- no wrapper padding or slicing passes."""
    B, S = x.shape
    Hp = w1_p.shape[1]
    A = w2_p.shape[1]

    TB = _choose_batch_tile(B, block_b)
    grid = (pl.cdiv(B, TB),)               # ragged last block is fine

    kernel = functools.partial(_policy_net_kernel,
                               action_bound=float(action_bound))

    return pl.pallas_call(
        kernel,
        out_shape=jax.ShapeDtypeStruct((B, A), jnp.float32),
        grid=grid,
        in_specs=[
            pl.BlockSpec((TB, S), lambda i: (i, 0)),   # streamed batch tile (f32)
            pl.BlockSpec((S, Hp), lambda i: (0, 0)),   # resident bf16 weights
            pl.BlockSpec((1, Hp), lambda i: (0, 0)),   # resident f32 bias
            pl.BlockSpec((Hp, A), lambda i: (0, 0)),   # resident bf16 weights
            pl.BlockSpec((1, A), lambda i: (0, 0)),    # resident f32 bias
        ],
        out_specs=pl.BlockSpec((TB, A), lambda i: (i, 0)),
        compiler_params=pltpu.CompilerParams(
            dimension_semantics=("parallel",),         # megacore on v7x
        ),
    )(x, w1_p, b1_p, w2_p, b2_p)


def init_policy_net_params(key, state_dim, hidden_dim, action_dim):
    """torch.nn.Linear-style init (uniform +-1/sqrt(fan_in)); weights stored
    pre-transposed as (in_dim, out_dim)."""
    k1, k2, k3, k4 = jax.random.split(key, 4)
    lim1 = 1.0 / jnp.sqrt(state_dim)
    lim2 = 1.0 / jnp.sqrt(hidden_dim)
    w1 = jax.random.uniform(k1, (state_dim, hidden_dim), jnp.float32, -lim1, lim1)
    b1 = jax.random.uniform(k2, (hidden_dim,), jnp.float32, -lim1, lim1)
    w2 = jax.random.uniform(k3, (hidden_dim, action_dim), jnp.float32, -lim2, lim2)
    b2 = jax.random.uniform(k4, (action_dim,), jnp.float32, -lim2, lim2)
    return w1, b1, w2, b2


def _reference_bf16(x, w1, b1, w2, b2, action_bound):
    """Forward with bf16-rounded MXU operands + f32 accumulation (what the
    kernel computes) -> tight tolerance."""
    xb = x.astype(jnp.bfloat16).astype(jnp.float32)
    w1b = w1.astype(jnp.bfloat16).astype(jnp.float32)
    w2b = w2.astype(jnp.bfloat16).astype(jnp.float32)
    h = jnp.maximum(xb @ w1b + b1, 0.0)
    hb = h.astype(jnp.bfloat16).astype(jnp.float32)
    return jnp.tanh(hb @ w2b + b2) * action_bound


def _reference_f32(x, w1, b1, w2, b2, action_bound):
    """Exact f32 PyTorch-equivalent forward -> loose tolerance (bf16 rounding
    of MXU operands is the only difference)."""
    return jnp.tanh(jnp.maximum(x @ w1 + b1, 0.0) @ w2 + b2) * action_bound


if __name__ == "__main__":
    key = jax.random.PRNGKey(0)
    batch, state_dim, hidden_dim, action_dim = 8, 16, 32, 4
    action_bound = 2.0

    kx, kp, kx2 = jax.random.split(key, 3)
    x = jax.random.normal(kx, (batch, state_dim), jnp.float32)
    w1, b1, w2, b2 = init_policy_net_params(kp, state_dim, hidden_dim, action_dim)

    # One-time (outside the hot path): pad hidden dim + cast weights to bf16.
    w1_p, b1_p, w2_p, b2_p = prepare_policy_net_params(w1, b1, w2, b2)

    # --- small single-block run ---
    out = policy_net_forward(x, w1_p, b1_p, w2_p, b2_p, action_bound)
    out = jax.block_until_ready(out)
    assert out.shape == (batch, action_dim)
    assert jnp.allclose(out, _reference_bf16(x, w1, b1, w2, b2, action_bound),
                        atol=2e-3, rtol=2e-3)
    assert jnp.allclose(out, _reference_f32(x, w1, b1, w2, b2, action_bound),
                        atol=1e-1, rtol=1e-1)

    # --- multi-step grid with a ragged last batch block (40 rows, TB=16) ---
    batch2 = 40
    x2 = jax.random.normal(kx2, (batch2, state_dim), jnp.float32)
    out2 = policy_net_forward(x2, w1_p, b1_p, w2_p, b2_p, action_bound,
                              block_b=16)
    out2 = jax.block_until_ready(out2)
    assert out2.shape == (batch2, action_dim)
    assert jnp.allclose(out2, _reference_bf16(x2, w1, b1, w2, b2, action_bound),
                        atol=2e-3, rtol=2e-3)
    assert jnp.allclose(out2, _reference_f32(x2, w1, b1, w2, b2, action_bound),
                        atol=1e-1, rtol=1e-1)

    print("KERNEL_OK")
</pallas_src>

<mosaic_0001>
module attributes {stable_mosaic.version = 11 : i64} {
  func.func @_policy_net_kernel(%arg0: i32, %arg1: memref<8x16xf32, #tpu.memory_space<vmem>>, %arg2: memref<16x128xbf16, #tpu.memory_space<vmem>>, %arg3: memref<1x128xf32, #tpu.memory_space<vmem>>, %arg4: memref<128x4xbf16, #tpu.memory_space<vmem>>, %arg5: memref<1x4xf32, #tpu.memory_space<vmem>>, %arg6: memref<8x4xf32, #tpu.memory_space<vmem>>) attributes {dimension_semantics = [#tpu.dimension_semantics<parallel>], iteration_bounds = array<i64: 1>, scalar_prefetch = 0 : i64, scratch_operands = 0 : i64, tpu.core_type = #tpu.core_type<tc>, window_params = [{transform_indices = @transform_0, window_bounds = array<i64: 8, 16>}, {pipeline_mode = #tpu.pipeline_mode<synchronous>, transform_indices = @transform_1, window_bounds = array<i64: 16, 128>}, {pipeline_mode = #tpu.pipeline_mode<synchronous>, transform_indices = @transform_2, window_bounds = array<i64: 1, 128>}, {pipeline_mode = #tpu.pipeline_mode<synchronous>, transform_indices = @transform_3, window_bounds = array<i64: 128, 4>}, {pipeline_mode = #tpu.pipeline_mode<synchronous>, transform_indices = @transform_4, window_bounds = array<i64: 1, 4>}, {transform_indices = @transform_5, window_bounds = array<i64: 8, 4>}]} {
    %c0 = arith.constant 0 : index
    %c0_0 = arith.constant 0 : index
    %0 = vector.load %arg1[%c0, %c0_0] : memref<8x16xf32, #tpu.memory_space<vmem>>, vector<8x16xf32>
    %1 = arith.truncf %0 : vector<8x16xf32> to vector<8x16xbf16>
    %c0_1 = arith.constant 0 : index
    %c0_2 = arith.constant 0 : index
    %2 = vector.load %arg2[%c0_1, %c0_2] : memref<16x128xbf16, #tpu.memory_space<vmem>>, vector<16x128xbf16>
    %cst = arith.constant dense<0.000000e+00> : vector<8x128xf32>
    %3 = tpu.matmul %1, %2, %cst {dimension_numbers = #tpu.dot_dimension_numbers<[1], [0], [0], [1], [0, 0, 1, 1], [], []>} : vector<8x16xbf16>, vector<16x128xbf16>, vector<8x128xf32> -> vector<8x128xf32>
    %c0_3 = arith.constant 0 : index
    %c0_4 = arith.constant 0 : index
    %4 = vector.load %arg3[%c0_3, %c0_4] : memref<1x128xf32, #tpu.memory_space<vmem>>, vector<1x128xf32>
    %5 = vector.broadcast %4 : vector<1x128xf32> to vector<8x128xf32>
    %6 = arith.addf %3, %5 : vector<8x128xf32>
    %cst_5 = arith.constant 0.000000e+00 : f32
    %7 = vector.broadcast %cst_5 : f32 to vector<8x128xf32>
    %8 = arith.maximumf %6, %7 : vector<8x128xf32>
    %9 = arith.truncf %8 : vector<8x128xf32> to vector<8x128xbf16>
    %c0_6 = arith.constant 0 : index
    %c0_7 = arith.constant 0 : index
    %10 = vector.load %arg4[%c0_6, %c0_7] : memref<128x4xbf16, #tpu.memory_space<vmem>>, vector<128x4xbf16>
    %cst_8 = arith.constant dense<0.000000e+00> : vector<8x4xf32>
    %11 = tpu.matmul %9, %10, %cst_8 {dimension_numbers = #tpu.dot_dimension_numbers<[1], [0], [0], [1], [0, 0, 1, 1], [], []>} : vector<8x128xbf16>, vector<128x4xbf16>, vector<8x4xf32> -> vector<8x4xf32>
    %c0_9 = arith.constant 0 : index
    %c0_10 = arith.constant 0 : index
    %12 = vector.load %arg5[%c0_9, %c0_10] : memref<1x4xf32, #tpu.memory_space<vmem>>, vector<1x4xf32>
    %13 = vector.broadcast %12 : vector<1x4xf32> to vector<8x4xf32>
    %14 = arith.addf %11, %13 : vector<8x4xf32>
    %15 = math.tanh %14 : vector<8x4xf32>
    %cst_11 = arith.constant 2.000000e+00 : f32
    %16 = vector.broadcast %cst_11 : f32 to vector<8x4xf32>
    %17 = arith.mulf %15, %16 : vector<8x4xf32>
    %c0_12 = arith.constant 0 : index
    %c0_13 = arith.constant 0 : index
    %18 = vector.load %arg6[%c0_12, %c0_13] : memref<8x4xf32, #tpu.memory_space<vmem>>, vector<8x4xf32>
    tpu.vector_store %arg6[%c0_12, %c0_13], %17 {strides = array<i32>} : memref<8x4xf32, #tpu.memory_space<vmem>>, vector<8x4xf32>,
    return
  }
  func.func @transform_0(%arg0: i32) -> (i32, i32) {
    %c0_i32 = arith.constant 0 : i32
    %c0_i32_0 = arith.constant 0 : i32
    return %arg0, %c0_i32 : i32, i32
  }
  func.func @transform_1(%arg0: i32) -> (i32, i32) {
    %c0_i32 = arith.constant 0 : i32
    %c0_i32_0 = arith.constant 0 : i32
    %c0_i32_1 = arith.constant 0 : i32
    return %c0_i32, %c0_i32_0 : i32, i32
  }
  func.func @transform_2(%arg0: i32) -> (i32, i32) {
    %c0_i32 = arith.constant 0 : i32
    %c0_i32_0 = arith.constant 0 : i32
    %c0_i32_1 = arith.constant 0 : i32
    return %c0_i32, %c0_i32_0 : i32, i32
  }
  func.func @transform_3(%arg0: i32) -> (i32, i32) {
    %c0_i32 = arith.constant 0 : i32
    %c0_i32_0 = arith.constant 0 : i32
    %c0_i32_1 = arith.constant 0 : i32
    return %c0_i32, %c0_i32_0 : i32, i32
  }
  func.func @transform_4(%arg0: i32) -> (i32, i32) {
    %c0_i32 = arith.constant 0 : i32
    %c0_i32_0 = arith.constant 0 : i32
    %c0_i32_1 = arith.constant 0 : i32
    return %c0_i32, %c0_i32_0 : i32, i32
  }
  func.func @transform_5(%arg0: i32) -> (i32, i32) {
    %c0_i32 = arith.constant 0 : i32
    %c0_i32_0 = arith.constant 0 : i32
    return %arg0, %c0_i32 : i32, i32
  }
}

</mosaic_0001>

<bundles_post_ra>
// kernel: tpu_custom_call.1
= control target key start
LH: loop header
LB: loop body
LE: loop exit
PB: predicated region body
PF: predicated region fallthrough
CT: control target
= control target key end

     0   :  { %vm35_vm0 = vcmask 130048   ;;  %vm137_vm1 = vcmask 31744   ;;  %s262_s1 = inlined_call_operand.vmem [shape: bf16[16,128], index: 1, kind: input, shape index: {}]   ;;  %s263_s0 = inlined_call_operand.vmem [shape: f32[8,16], index: 0, kind: input, shape index: {}]   ;;  %s264_s3 = inlined_call_operand.vmem [shape: bf16[128,4], index: 3, kind: input, shape index: {}]   ;;  %s265_s2 = inlined_call_operand.vmem [shape: f32[1,128], index: 2, kind: input, shape index: {}]   ;;  %s266_s4 = inlined_call_operand.vmem [shape: f32[1,4], index: 4, kind: input, shape index: {}]   ;;  %s267_s5 = inlined_call_operand.vmem [shape: f32[8,4], index: 5, kind: output, shape index: {}]  }
   0x1   :  { %v180_v0 = vld [vmem:[%s262_s1] sm:$0xff]  ;;  %v188_v2 = vld [vmem:[%s264_s3 + $0x38] sm:$0xff]  ;;  %v187_v4 = vld [vmem:[%s264_s3 + $0x30] sm:$0xff] }
   0x2   :  { %v21_v1 = vld [vmem:[%s263_s0] sm:$0xff]  ;;  %46 = vmatpush.bf16.msra.mxu0 %v180_v0  ;;  %122 = vmatpush.bf16.msra.mxu1 %v188_v2  ;;  %v186_v5 = vld [vmem:[%s264_s3 + $0x28] sm:$0xff]  ;;  %v184_v7 = vld [vmem:[%s264_s3 + $0x18] sm:$0xff] }
   0x3   :  { %v22_v3 = vpack.c.bf16 %v21_v1, %v21_v1  ;;  %v185_v6 = vld [vmem:[%s264_s3 + $0x20] sm:$0xff]  ;;  %v183_v8 = vld [vmem:[%s264_s3 + $0x10] sm:$0xff]  ;;  %v182_v9 = vld [vmem:[%s264_s3 + $0x8] sm:$0xff] }
   0x4   :  { %v181_v10 = vld [vmem:[%s264_s3] sm:$0xff] }
   0x5   :  { %147 = vmatmul.msk.bf16.vlgmr.msra.gmra.mxu0 %vm35_vm0, %v22_v3  ;;  %v189_v11 = vld [vmem:[%s265_s2] ss:$0 sm:$0xff] }
   0x6   :  { %123 = vmatpush.bf16.msra.mxu1 %v187_v4  ;;  %v190_v17 = vld [vmem:[%s266_s4] ss:$0 sm:$0xff] }
   0xa   :  { %124 = vmatpush.bf16.msra.mxu1 %v186_v5 }
   0xe   :  { %125 = vmatpush.bf16.msra.mxu1 %v185_v6 }
  0x12   :  { %126 = vmatpush.bf16.msra.mxu1 %v184_v7 }
  0x16   :  { %127 = vmatpush.bf16.msra.mxu1 %v183_v8 }
  0x1a   :  { %128 = vmatpush.bf16.msra.mxu1 %v182_v9 }
  0x1e   :  { %129 = vmatpush.bf16.msra.mxu1 %v181_v10 }
  0x82   :  { %v48_v12 = vpop.f32.mrf.mxu0 }
  0x83   :  { %v49_v13 = vadd.f32 %v189_v11, %v48_v12 }
  0x85   :  { %v52_v14 = vmax.f32 %v49_v13, 0.0 }
  0x87   :  { %v53_v15 = vpack.c.bf16 %v52_v14, %v52_v14 }
  0x89   :  { %130 = vmatmul.bf16.vlgmr.msra.gmra.mxu1 %v53_v15 }
  0x8a   :  { %v50_v16 = vpop.f32.mrf.mxu0 }
 0x106   :  { %v131_v18 = vpop.f32.mrf.mxu1 }
 0x107   :  { %v132_v19 = vadd.f32 %v190_v17, %v131_v18 }
 0x109   :  { %191 = vtanh.f32 %v132_v19 }
 0x10e   :  { %v133_v20 = vpop.f32.mrf.mxu1 }
 0x10f   :  { %v192_v21 = vpop.eup %191 }
 0x110   :  { %v136_v22 = vmul.f32 2.0, %v192_v21 }
 0x112   :  { %138 = vst.msk [vmem:[%s267_s5] sm:$0xff] %vm137_vm1, %v136_v22 }

</bundles_post_ra>
